<compile_context>
chip_gen: v6e
topology: v6e:2x2x1
jax: 0.10.0
libtpu: 0.0.40
codegen_flags: <defaults>
</compile_context>

<pallas_src>
import math

import jax
import jax.numpy as jnp
from jax.experimental import pallas as pl
from jax.experimental.pallas import tpu as pltpu


def _hbm_copy_kernel(emb_hbm_ref, out_hbm_ref, sem):
    # Single whole-table HBM -> HBM DMA (forward() == return param, so the
    # "compute" is a pure materialization of the parameter into the output).
    cp = pltpu.make_async_copy(emb_hbm_ref, out_hbm_ref, sem)
    cp.start()
    cp.wait()


def drug_embedding_forward(drug_embeddings):
    """Pallas forward pass of DrugEmbedding: returns the embedding table.

    drug_embeddings: (drug_num, drug_dim) array (the nn.Parameter).

    Note: if the caller does not require a distinct output buffer, simply
    returning `drug_embeddings` (or using input_output_aliases + donation) is
    strictly cheaper; this kernel is the minimal-cost materialized copy.
    """
    N, D = drug_embeddings.shape
    return pl.pallas_call(
        _hbm_copy_kernel,
        out_shape=jax.ShapeDtypeStruct((N, D), drug_embeddings.dtype),
        in_specs=[pl.BlockSpec(memory_space=pl.ANY)],
        out_specs=pl.BlockSpec(memory_space=pl.ANY),
        scratch_shapes=[pltpu.SemaphoreType.DMA(())],
        compiler_params=pltpu.CompilerParams(has_side_effects=True),
    )(drug_embeddings)


def _init_drug_embeddings(key, drug_num, drug_dim):
    """Matches torch nn.init.xavier_uniform_: U(-a, a), a = sqrt(6/(fan_in+fan_out))."""
    # TODO(synk): parameter initialization is module construction (host-side),
    # not forward-pass work, so it stays plain JAX rather than a kernel.
    bound = math.sqrt(6.0 / (drug_num + drug_dim))
    return jax.random.uniform(key, (drug_num, drug_dim), jnp.float32, -bound, bound)


if __name__ == "__main__":
    DRUG_NUM, DRUG_DIM = 16, 32

    key = jax.random.PRNGKey(0)
    drug_embeddings = _init_drug_embeddings(key, DRUG_NUM, DRUG_DIM)

    out = drug_embedding_forward(drug_embeddings)
    out = jax.block_until_ready(out)

    # forward() of the module returns the parameter itself.
    assert out.shape == (DRUG_NUM, DRUG_DIM)
    assert out.dtype == drug_embeddings.dtype
    assert jnp.array_equal(out, drug_embeddings), "mismatch vs reference (identity)"

    print("KERNEL_OK")
</pallas_src>

<mosaic_0001>
module attributes {stable_mosaic.version = 11 : i64} {
  func.func @_hbm_copy_kernel(%arg0: memref<16x32xf32, #tpu.memory_space<any>>, %arg1: memref<16x32xf32, #tpu.memory_space<any>>, %arg2: memref<!tpu.dma_semaphore, #tpu.memory_space<semaphore_mem>>) attributes {dimension_semantics = [], scalar_prefetch = 0 : i64, scratch_operands = 1 : i64, tpu.core_type = #tpu.core_type<tc>} {
    tpu.enqueue_dma source(%arg0 : memref<16x32xf32, #tpu.memory_space<any>>) target(%arg1 : memref<16x32xf32, #tpu.memory_space<any>>) target_semaphore(%arg2 : memref<!tpu.dma_semaphore, #tpu.memory_space<semaphore_mem>>)
    tpu.wait_dma2 semaphore(%arg2 : memref<!tpu.dma_semaphore, #tpu.memory_space<semaphore_mem>>) src(%arg0 : memref<16x32xf32, #tpu.memory_space<any>>) dst(%arg1 : memref<16x32xf32, #tpu.memory_space<any>>)
    return
  }
}

</mosaic_0001>

<bundles_post_ra>
// kernel: tpu_custom_call.1
= control target key start
LH: loop header
LB: loop body
LE: loop exit
PB: predicated region body
PF: predicated region fallthrough
CT: control target
= control target key end

     0   :  { %s28_s6 = smov [#allocation2]   ;;  %s29_s7 = smov 131072   ;;  %s47_s0 = inlined_call_operand.hbm [shape: f32[16,32], index: 0, kind: input, shape index: {}]   ;;  %s48_s1 = inlined_call_operand.hbm [shape: f32[16,32], index: 1, kind: output, shape index: {}]  }
   0x1   :  { %s30_s8 = smov 0  }
   0x2   :  { %12 = dma.general %s47_s0, 256, %s48_s1, %s28_s6, %s29_s7, [#allocation4], %s30_s8, 0  }
   0x3   :  { %26 = dma.done.wait [#allocation2], 256 }
   0x4   :  { %27 = vsyncadd [#allocation2], 4294967040 }
   0x5   :  { %16 = vsyncmov [#allocation2] }
   0x8   :  { %s17_s13 = vpop.sfrf %16 }
   0x9   :  { %p22_p0 = scmp.ne.s32.totalorder %s17_s13, 0 }
   0xb   :  { %21 = shalt.err (%p22_p0)  }

</bundles_post_ra>
